<compile_context>
chip_gen: v7x
topology: tpu7x:2x2x1
jax: 0.10.0
libtpu: 0.0.40
codegen_flags: <defaults>
</compile_context>

<pallas_src>
import functools

import jax
import jax.numpy as jnp
from jax.experimental import pallas as pl
from jax.experimental.pallas import tpu as pltpu


def _round_up(v, m):
    return ((v + m - 1) // m) * m


def _contrastive_partial_kernel(x0_ref, x1_ref, y_ref, out_ref, *, margin, total_rows):
    tm = x0_ref.shape[0]

    # Native-dtype DMA; upcast to f32 in-kernel (VPU work hidden under DMA).
    x0 = x0_ref[...].astype(jnp.float32)          # (TM, D)
    x1 = x1_ref[...].astype(jnp.float32)          # (TM, D)
    y = y_ref[...].astype(jnp.float32)            # (TM, 1)

    diff = x0 - x1
    dist_sq = jnp.sum(diff * diff, axis=1, keepdims=True)   # (TM, 1)
    dist = jnp.sqrt(dist_sq)
    mdist = jnp.maximum(margin - dist, 0.0)                  # clamp(margin - dist, min=0)
    per_sample = y * dist_sq + (1.0 - y) * (mdist * mdist)   # (TM, 1)

    # Mask the tail rows of the last (partial) block.  `total_rows` is a
    # Python static, so the compare is free; jnp.where (select) is used so
    # NaN/Inf garbage from out-of-bounds rows cannot propagate.
    row_ids = jax.lax.broadcasted_iota(jnp.int32, (tm, 1), 0) + pl.program_id(0) * tm
    per_sample = jnp.where(row_ids < total_rows, per_sample, 0.0)

    # Raw (unnormalized) partial sum for this block, broadcast into a fully
    # (8,128)-aligned output tile (lane-dense, unmasked stores).
    out_ref[...] = jnp.zeros((8, 128), jnp.float32) + jnp.sum(per_sample)


def kways_contrastive_loss(x0, x1, y, *, margin=1.0):
    """x0, x1: (K, B, D) floats; y: (K, B) 0/1 labels. Returns scalar f32 loss.

    Matches: sum_k [ sum_b (y*d^2 + (1-y)*clamp(margin-d,0)^2) / 2 / B ].
    """
    K, B, D = x0.shape
    rows = K * B

    itemsize = jnp.dtype(x0.dtype).itemsize
    packing = max(1, 4 // itemsize)
    sub = 8 * packing            # sublane alignment for the native dtype

    x0f = x0.reshape(rows, D)
    x1f = x1.reshape(rows, D)
    yf = y.reshape(rows, 1).astype(jnp.float32)

    # ---- Per-generation VMEM budget (v5e/v6e: 128 MiB phys, v7x: 64 MiB). ----
    try:
        info = pltpu.get_tpu_info()
        vmem_phys = int(getattr(info, "vmem_capacity_bytes", 0)) or (64 << 20)
    except Exception:
        vmem_phys = 64 << 20                         # conservative (v7x) fallback
    vmem_budget = max(16 << 20, min(48 << 20, (vmem_phys * 3) // 4))
    vmem_limit = max(32 << 20, min(vmem_phys - (4 << 20), vmem_budget + (8 << 20)))

    # ---- Tile selection. ----
    # Working set per row:
    #   2 feature inputs x 2 pipeline buffers (native dtype)
    # + 2 buffers of the lane-padded (TM, 1) label column (128 lanes * 4 B)
    # + ~4 full-width f32 intermediates (upcasts, diff, diff^2).
    per_row_bytes = (2 * 2 * D * itemsize) + (2 * 128 * 4) + (4 * D * 4)
    tm_vmem = max(sub, vmem_budget // per_row_bytes)
    # Target ~8 MiB of feature input per grid step (amortize ~0.35 us/step).
    tm_feat = max(sub, (8 << 20) // (2 * D * itemsize))
    TM = min(tm_vmem, tm_feat)
    TM = max(sub, (TM // sub) * sub)
    TM = min(TM, _round_up(rows, sub))

    # Prefer >= 2 (even) grid blocks so the "parallel" axis can split across
    # v7x's two TensorCores.
    if rows > sub:
        nb = pl.cdiv(rows, TM)
        if nb < 2 or nb % 2:
            target_nb = max(2, nb + (nb % 2))
            tm_alt = _round_up(pl.cdiv(rows, target_nb), sub)
            if pl.cdiv(rows, tm_alt) >= 2:
                TM = min(TM, tm_alt)
    num_blocks = pl.cdiv(rows, TM)

    kernel = functools.partial(
        _contrastive_partial_kernel, margin=float(margin), total_rows=rows
    )

    cost = pl.CostEstimate(
        flops=4 * rows * D,
        transcendentals=rows,
        bytes_accessed=2 * rows * D * itemsize + rows * 4 + num_blocks * 8 * 128 * 4,
    )

    partials = pl.pallas_call(
        kernel,
        out_shape=jax.ShapeDtypeStruct((num_blocks * 8, 128), jnp.float32),
        grid_spec=pltpu.PrefetchScalarGridSpec(
            num_scalar_prefetch=0,
            grid=(num_blocks,),
            in_specs=[
                pl.BlockSpec((TM, D), lambda i: (i, 0)),
                pl.BlockSpec((TM, D), lambda i: (i, 0)),
                pl.BlockSpec((TM, 1), lambda i: (i, 0)),
            ],
            out_specs=pl.BlockSpec((8, 128), lambda i: (i, 0)),
        ),
        compiler_params=pltpu.CompilerParams(
            dimension_semantics=("parallel",),   # independent per-block partials
            vmem_limit_bytes=int(vmem_limit),
        ),
        cost_estimate=cost,
    )(x0f, x1f, yf)

    # Each block's (8, 128) tile is a broadcast of its partial sum; take one
    # element per block, then normalize once: sum_k sum_b(...) / (2 * B).
    block_sums = partials.reshape(num_blocks, 8, 128)[:, 0, 0]
    return jnp.sum(block_sums) / (2.0 * B)


def _reference_loss(x0, x1, y, margin=1.0):
    # Pure-JAX reference matching the PyTorch semantics.
    def one(x0i, x1i, yi):
        diff = x0i - x1i
        dist_sq = jnp.sum(diff ** 2, axis=1)
        dist = jnp.sqrt(dist_sq)
        mdist = jnp.maximum(margin - dist, 0.0)
        loss = yi * dist_sq + (1.0 - yi) * mdist ** 2
        return jnp.sum(loss) / 2.0 / x0i.shape[0]

    total = 0.0
    for i in range(x0.shape[0]):
        total = total + one(x0[i], x1[i], y[i])
    return total


if __name__ == "__main__":
    K, B, D = 5, 8, 128  # k_ways=5 (module default); small, tile-friendly features
    key = jax.random.PRNGKey(0)
    k0, k1, ky = jax.random.split(key, 3)

    x0 = jax.random.normal(k0, (K, B, D), dtype=jnp.float32)
    x1 = jax.random.normal(k1, (K, B, D), dtype=jnp.float32)
    y = jax.random.bernoulli(ky, 0.5, (K, B)).astype(jnp.float32)

    out = kways_contrastive_loss(x0, x1, y, margin=1.0)
    out = jax.block_until_ready(out)

    ref = _reference_loss(x0, x1, y, margin=1.0)
    assert jnp.allclose(out, ref, rtol=1e-5, atol=1e-5), (out, ref)

    print("KERNEL_OK")
</pallas_src>

<mosaic_0001>
module attributes {stable_mosaic.version = 11 : i64} {
  func.func @_contrastive_partial_kernel(%arg0: i32, %arg1: memref<24x128xf32, #tpu.memory_space<vmem>>, %arg2: memref<24x128xf32, #tpu.memory_space<vmem>>, %arg3: memref<24x1xf32, #tpu.memory_space<vmem>>, %arg4: memref<8x128xf32, #tpu.memory_space<vmem>>) attributes {dimension_semantics = [#tpu.dimension_semantics<parallel>], iteration_bounds = array<i64: 2>, scalar_prefetch = 0 : i64, scratch_operands = 0 : i64, tpu.core_type = #tpu.core_type<tc>, window_params = [{transform_indices = @transform_0, window_bounds = array<i64: 24, 128>}, {transform_indices = @transform_1, window_bounds = array<i64: 24, 128>}, {transform_indices = @transform_2, window_bounds = array<i64: 24, 1>}, {transform_indices = @transform_3, window_bounds = array<i64: 8, 128>}]} {
    %c0 = arith.constant 0 : index
    %c0_0 = arith.constant 0 : index
    %0 = vector.load %arg1[%c0, %c0_0] : memref<24x128xf32, #tpu.memory_space<vmem>>, vector<24x128xf32>
    %c0_1 = arith.constant 0 : index
    %c0_2 = arith.constant 0 : index
    %1 = vector.load %arg2[%c0_1, %c0_2] : memref<24x128xf32, #tpu.memory_space<vmem>>, vector<24x128xf32>
    %c0_3 = arith.constant 0 : index
    %c0_4 = arith.constant 0 : index
    %2 = vector.load %arg3[%c0_3, %c0_4] : memref<24x1xf32, #tpu.memory_space<vmem>>, vector<24x1xf32>
    %3 = arith.subf %0, %1 : vector<24x128xf32>
    %4 = arith.mulf %3, %3 : vector<24x128xf32>
    %cst = arith.constant dense<0.000000e+00> : vector<24xf32>
    %5 = vector.multi_reduction <add>, %4, %cst [1] : vector<24x128xf32> to vector<24xf32>
    %6 = vector.shape_cast %5 : vector<24xf32> to vector<24x1xf32>
    %7 = math.sqrt %6 : vector<24x1xf32>
    %cst_5 = arith.constant 1.000000e+00 : f32
    %8 = vector.broadcast %cst_5 : f32 to vector<24x1xf32>
    %9 = arith.subf %8, %7 : vector<24x1xf32>
    %cst_6 = arith.constant 0.000000e+00 : f32
    %10 = vector.broadcast %cst_6 : f32 to vector<24x1xf32>
    %11 = arith.maximumf %9, %10 : vector<24x1xf32>
    %12 = arith.mulf %2, %6 : vector<24x1xf32>
    %cst_7 = arith.constant 1.000000e+00 : f32
    %13 = vector.broadcast %cst_7 : f32 to vector<24x1xf32>
    %14 = arith.subf %13, %2 : vector<24x1xf32>
    %15 = arith.mulf %11, %11 : vector<24x1xf32>
    %16 = arith.mulf %14, %15 : vector<24x1xf32>
    %17 = arith.addf %12, %16 : vector<24x1xf32>
    %18 = tpu.iota {dimensions = array<i32: 0>} : vector<24x1xi32>
    %c24_i32 = arith.constant 24 : i32
    %19 = arith.muli %arg0, %c24_i32 : i32
    %20 = vector.broadcast %19 : i32 to vector<24x1xi32>
    %21 = arith.addi %18, %20 : vector<24x1xi32>
    %c40_i32 = arith.constant 40 : i32
    %22 = vector.broadcast %c40_i32 : i32 to vector<24x1xi32>
    %23 = arith.cmpi slt, %21, %22 : vector<24x1xi32>
    %cst_8 = arith.constant 0.000000e+00 : f32
    %24 = vector.broadcast %cst_8 : f32 to vector<24x1xf32>
    %25 = arith.select %23, %17, %24 : vector<24x1xi1>, vector<24x1xf32>
    %cst_9 = arith.constant 0.000000e+00 : f32
    %26 = vector.broadcast %cst_9 : f32 to vector<8x128xf32>
    %27 = vector.shape_cast %25 : vector<24x1xf32> to vector<1x24x1xf32>
    %cst_10 = arith.constant dense<0.000000e+00> : vector<1xf32>
    %28 = vector.multi_reduction <add>, %27, %cst_10 [1, 2] : vector<1x24x1xf32> to vector<1xf32>
    %29 = vector.shape_cast %28 : vector<1xf32> to vector<1x1x1xf32>
    %30 = vector.extract %29[0, 0, 0] : f32 from vector<1x1x1xf32>
    %31 = vector.broadcast %30 : f32 to vector<8x128xf32>
    %32 = arith.addf %26, %31 : vector<8x128xf32>
    %c0_11 = arith.constant 0 : index
    %c0_12 = arith.constant 0 : index
    %33 = vector.load %arg4[%c0_11, %c0_12] : memref<8x128xf32, #tpu.memory_space<vmem>>, vector<8x128xf32>
    tpu.vector_store %arg4[%c0_11, %c0_12], %32 {strides = array<i32>} : memref<8x128xf32, #tpu.memory_space<vmem>>, vector<8x128xf32>,
    return
  }
  func.func @transform_0(%arg0: i32) -> (i32, i32) {
    %c0_i32 = arith.constant 0 : i32
    %c0_i32_0 = arith.constant 0 : i32
    return %arg0, %c0_i32 : i32, i32
  }
  func.func @transform_1(%arg0: i32) -> (i32, i32) {
    %c0_i32 = arith.constant 0 : i32
    %c0_i32_0 = arith.constant 0 : i32
    return %arg0, %c0_i32 : i32, i32
  }
  func.func @transform_2(%arg0: i32) -> (i32, i32) {
    %c0_i32 = arith.constant 0 : i32
    %c0_i32_0 = arith.constant 0 : i32
    return %arg0, %c0_i32 : i32, i32
  }
  func.func @transform_3(%arg0: i32) -> (i32, i32) {
    %c0_i32 = arith.constant 0 : i32
    %c0_i32_0 = arith.constant 0 : i32
    return %arg0, %c0_i32 : i32, i32
  }
}

</mosaic_0001>

<bundles_post_ra>
// kernel: tpu_custom_call.1
= control target key start
LH: loop header
LB: loop body
LE: loop exit
PB: predicated region body
PF: predicated region fallthrough
CT: control target
= control target key end

     0   :  { %8 = vsyncpa [#allocation3], 0  ;;  %s850_s0 = inlined_call_operand.vmem [shape: f32[40,128], index: 0, kind: input, shape index: {}]   ;;  %s851_s1 = inlined_call_operand.hbm [shape: f32[40,128], index: 1, kind: input, shape index: {}]   ;;  %s852_s2 = inlined_call_operand.vmem [shape: f32[40,1], index: 2, kind: input, shape index: {}]   ;;  %s853_s3 = inlined_call_operand.hbm [shape: f32[16,128], index: 3, kind: output, shape index: {}]  }
   0x1   :  { %10 = vsyncpa [#allocation3 + $0x1], 0 }
   0x2   :  { %11 = vsyncpa [#allocation4], 0 }
   0x3   :  { %13 = vsyncpa [#allocation4 + $0x1], 0  ;;  %s677_s12 = smov 0   ;;  %s679_s13 = smov 0  }
   0x4   :  { %s681_s14 = smov 0   ;;  %s683_s15 = smov 0  }
   0x5 LB: > { %s698_s16 = sadd.s32 4294967295, %s651_s15   ;;  %s488_s17 = sadd.s32 4294967294, %s651_s15   ;;  %s651_s15 = sphi %s683_s15, %s863_s15   ;;  %s647_s14 = sphi %s681_s14, %s862_s14   ;;  %s643_s13 = sphi %s679_s13, %s861_s13   ;;  %s639_s12 = sphi %s677_s12, %s860_s12  }
   0x6   : > { %s702_s18 = sadd.s32 1, %s651_s15   ;;  %s52_s19 = sadd.s32 1, %s647_s14 }
   0x7   : > { %s49_s20 = ssub.s32 %s651_s15, %s702_s18  ;;  %p59_p0 = scmp.ne.s32.totalorder %s647_s14, %s643_s13 }
   0x8   : > { %p50_p1 = scmp.eq.s32.totalorder %s49_s20, 0  ;;  %p60_p2 = scmp.eq.s32.totalorder %s651_s15, 0 }
   0x9   : > { %p65_p3 = scmp.ne.s32.totalorder %s643_s13, %s639_s12  ;;  %p66_p4 = scmp.eq.s32.totalorder %s698_s16, 0 }
   0xa   : > { %s714_s21 = scalar_select %p50_p1, %s647_s14, %s52_s19  }
   0xb   : > { %p61_p5 = por %p60_p2, %p59_p0  ;;  %p716_p6 = por %p66_p4, %p65_p3 }
   0xc   : > { %p115_p7 = scmp.eq.s32.totalorder %s698_s16, 1  ;;  %p121_p8 = scmp.eq.s32.totalorder %s488_s17, 1 }
   0xd   : > { %p854_p11 = scmp.ge.s32.totalorder %s651_s15, 2 }
   0xe   : > { %p721_p9 = por %p115_p7, %p59_p0  ;;  %p725_p10 = por %p121_p8, %p65_p3 }
   0xf   : > { %137 = sbr.rel (%p854_p11) target bundleno = 57 (0x39), region = 16 }
  0x10   : > { %s857_s24 = scalar_select %p725_p10, 1, 0 }
  0x16   : > { %157 = sbr.rel (!%p61_p5) target bundleno = 57 (0x39), region = 24  ;;  %s158_s25 = sand.u32 (%p61_p5), 1, %s647_s14  }
  0x17   : > { %s163_s26 = smul.u32 (%p61_p5), 3, %s651_s15  ;;  %s737_s4 = scalar_lea.sflag (%p61_p5), [#allocation3], %s158_s25 }
  0x18   : > { %s505_s27 = smul.u32 (%p61_p5), 24, %s158_s25 }
  0x19   : > { %s164_s28 = ssub.s32 (%p61_p5), 5, %s163_s26 }
  0x1a   : > { %p165_p12 = scmp.lt.s32.totalorder (%p61_p5), %s164_s28, 3  ;;  %s162_s5 = scalar_lea.vmem (%p61_p5), [#allocation2], %s505_s27 }
  0x1d   : > { %s865_s28 = smov (!%p165_p12, %s164_s28), 3 }
  0x1e   : > { %s734_s29 = sshll.u32 %s865_s28, 7 }
  0x1f   : > { %s169_s30 = ssub.s32 384, %s734_s29 }
  0x20   : > { %170 = vsyncadd %s737_s4, %s169_s30  ;;  %p492_p13 = scmp.ne.s32.totalorder %s734_s29, 0  ;;  %s504_s6 = smul.u32 384, %s651_s15 }
  0x21   : > { %s175_s7 = sshll.u32 %s162_s5, 4  ;;  %s561_s20 = scalar_lea.hbm %s851_s1, 640  ;;  %s747_s7 = int_to_ptr.vmem [resolvable:$true] %s175_s7 }
  0x22   : > { %s745_s10 = scalar_lea.hbm %s851_s1, %s504_s6 }
  0x23   : > { %s557_s11 = scalar_lea.hbm %s745_s10, %s734_s29  ;;  %p562_p3 = scmp.lt.u32.totalorder %s745_s10, %s851_s1 }
  0x24   : > { %p558_p0 = scmp.ne.s32.totalorder %s745_s10, %s557_s11  ;;  %p563_p4 = scmp.lt.u32.totalorder %s561_s20, %s557_s11 }
  0x25   : > { %p565_p7 = scmp.lt.u32.totalorder %s557_s11, %s745_s10 }
  0x26   : > { %p559_p1 = pnand %p558_p0, %p492_p13  ;;  %p564_p5 = por %p563_p4, %p562_p3 }
  0x28   : > { %p560_p2 = pneg %p559_p1  ;;  %p566_p8 = por %p565_p7, %p564_p5 }
  0x2a   : > { %p567_p12 = pnand %p566_p8, %p560_p2 }
  0x2c   : > { %570 = shalt.err (!%p567_p12)
}
  0x2d   : > { %s571_s27 = scalar_lea.vmem %s747_s7, %s734_s29  ;;  %s653_s28 = smov [#allocation2]  }
  0x2e   : > { %p572_p0 = scmp.ne.s32.totalorder %s747_s7, %s571_s27  ;;  %s575_s30 = sshll.u32 %s653_s28, 4  ;;  %s576_s30 = int_to_ptr.vmem [resolvable:$false] %s575_s30 }
  0x2f   : > { %s577_s5 = scalar_lea.vmem %s576_s30, 768  ;;  %p578_p10 = scmp.lt.s32.totalorder %s747_s7, %s576_s30 }
  0x30   : > { %p573_p1 = pnand %p572_p0, %p492_p13  ;;  %p579_p3 = scmp.lt.s32.totalorder %s577_s5, %s571_s27 }
  0x32   : > { %p574_p11 = pneg %p573_p1  ;;  %p580_p4 = por %p579_p3, %p578_p10 }
  0x34   : > { %p581_p5 = pnand %p580_p4, %p574_p11 }
  0x36   : > { %584 = shalt.err (!%p581_p5)
}
  0x37   : > { %s654_s6 = smov 128   ;;  %s655_s8 = smov 8  }
  0x38   : > { %181 = dma.hbm_to_vmem [thread:$0]  (%p492_p13), %s745_s10, %s734_s29, %s747_s7, %s737_s4, %s654_s6, %s654_s6, %s655_s8  }
  0x39 PF: > { %p496_p2 = scmp.ge.s32.totalorder %s651_s15, 1  ;;  %p200_p7 = scmp.lt.s32.totalorder %s651_s15, 3 }
  0x3b   : > { %p201_p8 = pnand %p496_p2, %p200_p7 }
  0x3c   : > { %s777_s9 = sand.u32 (!%p201_p8), 1, %s643_s13  }
  0x3d   : > { %204 = sbr.rel (%p201_p8) target bundleno = 477 (0x1dd), region = 32  ;;  %s207_s17 = scalar_lea.sflag (!%p201_p8), [#allocation3], %s777_s9 }
  0x3e   : > { %s506_s11 = smul.u32 (!%p201_p8), 24, %s777_s9 }
  0x40   : > { %s210_s19 = scalar_lea.vmem (!%p201_p8), [#allocation2], %s506_s11 }
  0x44   : > { %630 = dma.done.wait (%p716_p6), %s207_s17, 384  }
  0x45   : > { %632 = vsyncadd (%p716_p6), %s207_s17, 4294966912  ;;  %s251_s29 = smul.u32 3, %s698_s16  ;;  %v289_v0 = vld [vmem:[%s210_s19 + $0x10] sm:$0xff]  ;;  %v287_v1 = vld [vmem:[%s210_s19] sm:$0xff]  ;;  %v347_v18 = vlaneseq  ;;  %vm362_vm9 = vcmask 7168   ;;  %s497_s28 = sshll.u32 %s777_s9, 3 }
  0x46   : > { %v288_v2 = vld [vmem:[%s210_s19 + $0x8] sm:$0xff]  ;;  %s351_s27 = smul.u32 24, %s698_s16  ;;  %s250_s30 = scalar_lea.vmem [#allocation5], %s497_s28 }
  0x47   : > { %p256_p10 = scmp.lt.s32.totalorder %s251_s29, 4  ;;  %v348_v29 = vshrl.u32 %v347_v18, 7  ;;  %s394_s5 = sshll.u32 %s250_s30, 4  ;;  %s803_s5 = int_to_ptr.vmem [resolvable:$true] %s394_s5 }
  0x48   : > { %v352_v39 = vstv %s351_s27  ;;  %s501_s6 = sshll.u32 %s698_s16, 7  ;;  %s656_s16 = smov [#allocation5]  }
  0x49   : > { %s867_s29 = smov (!%p256_p10, %s251_s29), 4  ;;  %v349_v42 = vadd.s32 8, %v348_v29  ;;  %v350_v43 = vadd.s32 16, %v348_v29  ;;  %v353_v48 = vadd.s32 %v352_v39, %v348_v29  ;;  %s808_s19 = scalar_lea.hbm %s853_s3, %s501_s6 }
  0x4a   : > { %s498_s4 = sshll.u32 %s867_s29, 3  ;;  %s381_s29 = scalar_lea.sflag [#allocation4], %s777_s9 }
  0x4b   : > { %s259_s20 = scalar_lea.vmem %s850_s0, %s498_s4  ;;  %s795_s26 = scalar_lea.vmem %s852_s2, %s498_s4  ;;  %v354_v53 = vadd.s32 %v352_v39, %v349_v42  ;;  %v355_v54 = vadd.s32 %v352_v39, %v350_v43  ;;  %vm356_vm6 = vcmp.lt.s32.totalorder %v353_v48, 40 }
  0x4c   : > { %v286_v3 = vld [vmem:[%s259_s20 + $0x10] sm:$0xff]  ;;  %v284_v5 = vld [vmem:[%s259_s20] sm:$0xff]  ;;  %v285_v6 = vld [vmem:[%s259_s20 + $0x8] sm:$0xff]  ;;  %s585_s4 = scalar_lea.vmem %s803_s5, 128  ;;  %s589_s7 = sshll.u32 %s656_s16, 4  ;;  %s590_s7 = int_to_ptr.vmem [resolvable:$false] %s589_s7 }
  0x4d   : > { %v295_v4 = vsub.f32 %v286_v3, %v289_v0  ;;  %v293_v7 = vsub.f32 %v284_v5, %v287_v1  ;;  %v294_v8 = vsub.f32 %v285_v6, %v288_v2  ;;  %v290_v26 = vld [vmem:[%s795_s26] sm:$0xff]  ;;  %v292_v30 = vld [vmem:[%s795_s26 + $0x10] sm:$0xff]  ;;  %v291_v44 = vld [vmem:[%s795_s26 + $0x8] sm:$0xff]  ;;  %vm357_vm7 = vcmp.lt.s32.totalorder %v354_v53, 40  ;;  %p586_p6 = scmp.ne.s32.totalorder %s803_s5, %s585_s4  ;;  %s591_s10 = scalar_lea.vmem %s590_s7, 256 }
  0x4e   : > { %v335_v31 = vsub.f32 1.0, %v290_v26  ;;  %v337_v34 = vsub.f32 1.0, %v292_v30  ;;  %v336_v47 = vsub.f32 1.0, %v291_v44  ;;  %vm358_vm8 = vcmp.lt.s32.totalorder %v355_v54, 40  ;;  %p592_p12 = scmp.lt.s32.totalorder %s803_s5, %s590_s7  ;;  %p593_p0 = scmp.lt.s32.totalorder %s591_s10, %s585_s4 }
  0x4f   : > { %v298_v9 = vmul.f32 %v295_v4, %v295_v4  ;;  %v296_v10 = vmul.f32 %v293_v7, %v293_v7  ;;  %v297_v11 = vmul.f32 %v294_v8, %v294_v8  ;;  %p587_p11 = pnand %p586_p6, %p721_p9 }
  0x50   : > { %p594_p1 = por %p593_p0, %p592_p12 }
  0x51   : > { %303 = vadd.xlane.f32.xlu1 %v298_v9  ;;  %299 = vadd.xlane.f32.xlu0 %v296_v10  ;;  %p588_p13 = pneg %p587_p11 }
  0x53   : > { %p595_p3 = pnand %p594_p1, %p588_p13 }
  0x55   : > { %301 = vadd.xlane.f32.xlu0 %v297_v11 }
  0xde   : > { %v304_v12 = vpop.xlane.xlu1 %303  ;;  %v300_v13 = vpop.xlane.xlu0 %299 }
  0xdf   : > { %551 = vrsqrt.f32 %v304_v12  ;;  %vm321_vm0 = vcmp.eq.f32.partialorder %v304_v12, inf  ;;  %v324_v20 = vand.u32 2147483648, %v304_v12  ;;  %vm307_vm1 = vcmp.eq.f32.partialorder %v300_v13, inf }
  0xe0   : > { %553 = vrsqrt.f32 %v300_v13  ;;  %v310_v21 = vand.u32 2147483648, %v300_v13  ;;  %vm323_vm2 = vcmp.eq.f32.partialorder %v304_v12, 0.0  ;;  %vm309_vm3 = vcmp.eq.f32.partialorder %v300_v13, 0.0 }
  0xe1   : > { %v332_v50 = vmul.f32 %v300_v13, %v290_v26  ;;  %v334_v55 = vmul.f32 %v304_v12, %v292_v30 }
  0xe2   : > { %v302_v14 = vpop.xlane.xlu0 %301 }
  0xe3   : > { %555 = vrsqrt.f32 %v302_v14  ;;  %vm314_vm4 = vcmp.eq.f32.partialorder %v302_v14, inf  ;;  %v317_v35 = vand.u32 2147483648, %v302_v14  ;;  %vm316_vm5 = vcmp.eq.f32.partialorder %v302_v14, 0.0 }
  0xe4   : > { %v333_v58 = vmul.f32 %v302_v14, %v291_v44 }
  0xe9   : > { %v552_v15 = vpop.eup %551 }
  0xea   : > { %v554_v16 = vpop.eup %553  ;;  %v320_v17 = vmul.f32 %v552_v15, %v304_v12 }
  0xeb   : > { %v306_v19 = vmul.f32 %v554_v16, %v300_v13 }
  0xec   : > { %v322_v22 = vsel %vm321_vm0, %v304_v12, %v320_v17 }
  0xed   : > { %v308_v23 = vsel %vm307_vm1, %v300_v13, %v306_v19  ;;  %v325_v24 = vsel %vm323_vm2, %v324_v20, %v322_v22  ;;  %v556_v25 = vpop.eup %555 }
  0xee   : > { %v311_v27 = vsel %vm309_vm3, %v310_v21, %v308_v23  ;;  %v328_v28 = vsub.f32 1.0, %v325_v24  ;;  %v313_v32 = vmul.f32 %v556_v25, %v302_v14 }
  0xef   : > { %v326_v33 = vsub.f32 1.0, %v311_v27 }
  0xf0   : > { %v331_v36 = vmax.f32 %v328_v28, 0.0  ;;  %v315_v37 = vsel %vm314_vm4, %v302_v14, %v313_v32 }
  0xf1   : > { %v329_v38 = vmax.f32 %v326_v33, 0.0  ;;  %v318_v40 = vsel %vm316_vm5, %v317_v35, %v315_v37 }
  0xf2   : > { %v340_v41 = vmul.f32 %v331_v36, %v331_v36  ;;  %v327_v45 = vsub.f32 1.0, %v318_v40 }
  0xf3   : > { %v338_v46 = vmul.f32 %v329_v38, %v329_v38 }
  0xf4   : > { %v330_v49 = vmax.f32 %v327_v45, 0.0  ;;  %v343_v52 = vmul.f32 %v340_v41, %v337_v34 }
  0xf5   : > { %v341_v51 = vmul.f32 %v338_v46, %v335_v31 }
  0xf6   : > { %v339_v56 = vmul.f32 %v330_v49, %v330_v49  ;;  %v346_v60 = vadd.f32 %v343_v52, %v334_v55 }
  0xf7   : > { %v344_v57 = vadd.f32 %v341_v51, %v332_v50 }
  0xf8   : > { %v342_v59 = vmul.f32 %v339_v56, %v336_v47  ;;  %v361_v0 = vsel %vm358_vm8, %v346_v60, 0.0 }
  0xf9   : > { %v359_v62 = vsel %vm356_vm6, %v344_v57, 0.0  ;;  %v366_v4 = vsel %vm362_vm9, %v361_v0, 0.0 }
  0xfa   : > { %v345_v61 = vadd.f32 %v342_v59, %v333_v58  ;;  %v363_v1 = vsel %vm362_vm9, %v359_v62, 0.0 }
  0xfc   : > { %v360_v63 = vsel %vm357_vm7, %v345_v61, 0.0 }
  0xfd   : > { %v364_v2 = vsel %vm362_vm9, %v360_v63, 0.0 }
  0xfe   : > { %v365_v3 = vadd.f32 %v364_v2, %v363_v1 }
 0x100   : > { %v367_v5 = vadd.f32 %v366_v4, %v365_v3 }
 0x102   : > { %368 = vadd.xlane.f32.xlu1 %v367_v5 }
 0x18f   : > { %v369_v6 = vpop.xlane.xlu1 %368 }
 0x190   : > { %v370_v7 = vrot.slane %v369_v6, 4 }
 0x192   : > { %v371_v8 = vadd.f32 %v370_v7, %v369_v6 }
 0x194   : > { %v372_v9 = vrot.slane %v371_v8, 2 }
 0x196   : > { %v373_v10 = vadd.f32 %v372_v9, %v371_v8 }
 0x198   : > { %v374_v11 = vrot.slane %v373_v10, 1 }
 0x19a   : > { %v375_v12 = vadd.f32 %v374_v11, %v373_v10 }
 0x19c   : > { %507 = vpush %v375_v12 }
 0x1cd   : > { %s508_s8 = spop %507 }
 0x1ce   : > { %v377_v13 = vstv %s508_s8 }
 0x1cf   : > { %379 = vst [vmem:[%s250_s30] sm:$0xff] %v377_v13 }
 0x1d0   : > { %598 = shalt.err (!%p595_p3)
}
 0x1d1   : > { %s599_s9 = scalar_lea.hbm %s808_s19, 128  ;;  %s603_s25 = scalar_lea.hbm %s853_s3, 256 }
 0x1d2   : > { %p600_p4 = scmp.ne.s32.totalorder %s808_s19, %s599_s9  ;;  %p604_p7 = scmp.lt.u32.totalorder %s808_s19, %s853_s3 }
 0x1d3   : > { %p605_p8 = scmp.lt.u32.totalorder %s603_s25, %s599_s9  ;;  %p607_p6 = scmp.lt.u32.totalorder %s599_s9, %s808_s19 }
 0x1d4   : > { %p601_p5 = pnand %p600_p4, %p721_p9 }
 0x1d5   : > { %p606_p10 = por %p605_p8, %p604_p7 }
 0x1d6   : > { %p602_p2 = pneg %p601_p5 }
 0x1d7   : > { %p608_p11 = por %p607_p6, %p606_p10 }
 0x1d9   : > { %p609_p13 = pnand %p608_p11, %p602_p2 }
 0x1db   : > { %612 = shalt.err (!%p609_p13)
}
 0x1dc   : > { %510 = dma.vmem_to_hbm [thread:$0]  (%p721_p9), %s803_s5, 128, %s808_s19, %s381_s29  }
 0x1dd PF: > { %s406_s28 = sand.u32 1, %s639_s12   ;;  %p858_p12 = scmp.ne.s32.totalorder %s857_s24, 0 }
 0x1de   : > { %p859_p0 = scmp.ge.s32.totalorder %s651_s15, 2  ;;  %s407_s30 = scalar_lea.sflag [#allocation4], %s406_s28 }
 0x1e0   : > { %p513_p1 = pnand %p859_p0, %p858_p12 }
 0x1e2   : > { %634 = dma.done.wait (!%p513_p1), %s407_s30, 128  }
 0x1e3   : > { %636 = vsyncadd (!%p513_p1), %s407_s30, 4294967168  ;;  %p16_p3 = scmp.ge.s32.totalorder %s702_s18, 4   ;;  %s860_s12 = smov %s643_s13 }
 0x1e4   : > { %s861_s13 = smov %s647_s14  ;;  %s862_s14 = smov %s714_s21 }
 0x1e5   : > { %s863_s15 = smov %s702_s18  ;;  %18 = sbr.rel (!%p16_p3) target bundleno = 5 (0x5), region = 83 }
 0x1ec   :  { %412 = vsyncpa [#allocation3], 1 }
 0x1ed   :  { %414 = vsyncpa [#allocation3 + $0x1], 1 }
 0x1ee   :  { %415 = vsyncpa [#allocation4], 1 }
 0x1ef   :  { %417 = vsyncpa [#allocation4 + $0x1], 1 }

</bundles_post_ra>
